<compile_context>
chip_gen: v5e
topology: v5e:2x2
jax: 0.10.0
libtpu: 0.0.40
codegen_flags: <defaults>
</compile_context>

<pallas_src>
import jax
import jax.numpy as jnp
from jax.experimental import pallas as pl
from jax.experimental.pallas import tpu as pltpu


def _scaled_attention_kernel(x_ref, m_ref, wq_ref, wkv_ref, wo_ref, o_ref):
    """Processes a (Bt, Lq/Lm, F) batch tile; all matmuls + softmax fused."""
    Bt, Lq, F = x_ref.shape
    _, Lm, _ = m_ref.shape
    D = wq_ref.shape[1]

    # Flatten (batch, seq) into the matmul M dimension for the projections.
    x2 = x_ref[...].reshape(Bt * Lq, F)          # native dtype
    m2 = m_ref[...].reshape(Bt * Lm, F)          # native dtype

    # Q projection (depth**-0.5 already folded into wq in the wrapper).
    q = jnp.dot(x2, wq_ref[...], preferred_element_type=jnp.float32)      # (Bt*Lq, D)
    # Fused K/V projection: one matmul with output width 2D.
    kv = jnp.dot(m2, wkv_ref[...], preferred_element_type=jnp.float32)    # (Bt*Lm, 2D)

    q3 = q.reshape(Bt, Lq, D)
    k3 = kv[:, :D].reshape(Bt, Lm, D)
    v3 = kv[:, D:].reshape(Bt, Lm, D)

    # logits[b] = q[b] @ k[b]^T, expressed without an explicit transpose:
    # contract last dim of q with last dim of k, batch over dim 0.
    logits = jax.lax.dot_general(
        q3, k3, (((2,), (2,)), ((0,), (0,))),
        preferred_element_type=jnp.float32)                               # (Bt, Lq, Lm)

    # Numerically-stable softmax; keep elementwise math in f32 (v5e-friendly).
    logits = logits - jnp.max(logits, axis=-1, keepdims=True)
    p = jnp.exp(logits)
    inv_denom = pl.reciprocal(jnp.sum(p, axis=-1, keepdims=True), approx=True)

    # ctx[b] = softmax(logits[b]) @ v[b]; reciprocal folded into the rescale.
    ctx = jax.lax.dot_general(
        p.astype(v3.dtype), v3, (((2,), (1,)), ((0,), (0,))),
        preferred_element_type=jnp.float32)                               # (Bt, Lq, D)
    ctx = ctx * inv_denom

    # Output projection.
    out = jnp.dot(ctx.reshape(Bt * Lq, D).astype(wo_ref.dtype), wo_ref[...],
                  preferred_element_type=jnp.float32)                     # (Bt*Lq, D)
    o_ref[...] = out.reshape(Bt, Lq, D).astype(o_ref.dtype)


def _pick_batch_tile(B, Lq, target_rows=128):
    """Largest divisor of B such that Bt*Lq stays near `target_rows` sublanes."""
    bt = max(1, min(B, max(1, target_rows // max(Lq, 1))))
    while B % bt:
        bt -= 1
    return bt


def scaled_attention(x, memory, wq_t, wk_t, wv_t, wo_t, depth):
    """x: (B, Lq, F), memory: (B, Lm, F), w*_t: (F, D)  ->  (B, Lq, D).

    Note: as in the original module, the output projection only type-checks
    when in_feature == depth.
    """
    B, Lq, F = x.shape
    _, Lm, _ = memory.shape
    D = wq_t.shape[1]

    # One-time, outside-the-grid weight prep:
    #   * fold the depth**-0.5 query scale into Wq,
    #   * fuse K and V weights along the output dim.
    wq_scaled = (wq_t * (depth ** -0.5)).astype(wq_t.dtype)
    wkv = jnp.concatenate([wk_t, wv_t], axis=1)                 # (F, 2D)

    Bt = _pick_batch_tile(B, Lq)

    return pl.pallas_call(
        _scaled_attention_kernel,
        out_shape=jax.ShapeDtypeStruct((B, Lq, D), x.dtype),
        grid_spec=pltpu.PrefetchScalarGridSpec(
            num_scalar_prefetch=0,
            grid=(pl.cdiv(B, Bt),),
            in_specs=[
                pl.BlockSpec((Bt, Lq, F), lambda b: (b, 0, 0)),   # input
                pl.BlockSpec((Bt, Lm, F), lambda b: (b, 0, 0)),   # memory
                pl.BlockSpec((F, D), lambda b: (0, 0)),           # Wq^T (pre-scaled)
                pl.BlockSpec((F, 2 * D), lambda b: (0, 0)),       # [Wk^T | Wv^T]
                pl.BlockSpec((wo_t.shape[0], D), lambda b: (0, 0)),  # Wo^T
            ],
            out_specs=pl.BlockSpec((Bt, Lq, D), lambda b: (b, 0, 0)),
        ),
        compiler_params=pltpu.CompilerParams(
            dimension_semantics=("parallel",),
            vmem_limit_bytes=32 * 1024 * 1024,
        ),
    )(x, memory, wq_scaled, wkv, wo_t)


def scaled_attention_ref(x, memory, wq_t, wk_t, wv_t, wo_t, depth):
    """Pure-JAX reference of the intended forward pass."""
    q = x @ wq_t
    k = memory @ wk_t
    v = memory @ wv_t
    q = q * (depth ** -0.5)
    logit = jnp.einsum("bqd,bkd->bqk", q, k)
    attn = jax.nn.softmax(logit, axis=-1)
    ctx = jnp.einsum("bqk,bkd->bqd", attn, v)
    return ctx @ wo_t


if __name__ == "__main__":
    # Small shapes consistent with the module. The module's output projection is
    # Linear(in_feature, depth), so the forward only type-checks when
    # in_feature == depth.
    B, Lq, Lm = 2, 8, 8
    in_feature = depth = 32

    key = jax.random.PRNGKey(0)
    kx, km, k1, k2, k3, k4 = jax.random.split(key, 6)

    x = jax.random.normal(kx, (B, Lq, in_feature), dtype=jnp.float32)
    memory = jax.random.normal(km, (B, Lm, in_feature), dtype=jnp.float32)

    # Deterministic parameter init (torch.nn.Linear weight is [depth, in_feature];
    # we store the transpose [in_feature, depth]).
    scale = 1.0 / jnp.sqrt(in_feature)
    wq_t = (jax.random.uniform(k1, (in_feature, depth), jnp.float32) * 2 - 1) * scale
    wk_t = (jax.random.uniform(k2, (in_feature, depth), jnp.float32) * 2 - 1) * scale
    wv_t = (jax.random.uniform(k3, (in_feature, depth), jnp.float32) * 2 - 1) * scale
    wo_t = (jax.random.uniform(k4, (in_feature, depth), jnp.float32) * 2 - 1) * scale

    out = scaled_attention(x, memory, wq_t, wk_t, wv_t, wo_t, depth)
    out = jax.block_until_ready(out)

    ref = scaled_attention_ref(x, memory, wq_t, wk_t, wv_t, wo_t, depth)
    assert out.shape == (B, Lq, depth)
    # Tolerance loosened slightly for the EUP approximate reciprocal in softmax.
    assert jnp.allclose(out, ref, atol=5e-3, rtol=5e-3), "mismatch vs reference"

    print("KERNEL_OK")
</pallas_src>

<mosaic_0001>
module attributes {stable_mosaic.version = 11 : i64} {
  func.func @_scaled_attention_kernel(%arg0: i32, %arg1: memref<2x8x32xf32, #tpu.memory_space<vmem>>, %arg2: memref<2x8x32xf32, #tpu.memory_space<vmem>>, %arg3: memref<32x32xf32, #tpu.memory_space<vmem>>, %arg4: memref<32x64xf32, #tpu.memory_space<vmem>>, %arg5: memref<32x32xf32, #tpu.memory_space<vmem>>, %arg6: memref<2x8x32xf32, #tpu.memory_space<vmem>>) attributes {dimension_semantics = [#tpu.dimension_semantics<parallel>], iteration_bounds = array<i64: 1>, scalar_prefetch = 0 : i64, scratch_operands = 0 : i64, tpu.core_type = #tpu.core_type<tc>, window_params = [{transform_indices = @transform_0, window_bounds = array<i64: 2, 8, 32>}, {transform_indices = @transform_1, window_bounds = array<i64: 2, 8, 32>}, {pipeline_mode = #tpu.pipeline_mode<synchronous>, transform_indices = @transform_2, window_bounds = array<i64: 32, 32>}, {pipeline_mode = #tpu.pipeline_mode<synchronous>, transform_indices = @transform_3, window_bounds = array<i64: 32, 64>}, {pipeline_mode = #tpu.pipeline_mode<synchronous>, transform_indices = @transform_4, window_bounds = array<i64: 32, 32>}, {transform_indices = @transform_5, window_bounds = array<i64: 2, 8, 32>}]} {
    %c0 = arith.constant 0 : index
    %c0_0 = arith.constant 0 : index
    %c0_1 = arith.constant 0 : index
    %0 = vector.load %arg1[%c0, %c0_0, %c0_1] : memref<2x8x32xf32, #tpu.memory_space<vmem>>, vector<2x8x32xf32>
    %1 = vector.shape_cast %0 : vector<2x8x32xf32> to vector<16x32xf32>
    %c0_2 = arith.constant 0 : index
    %c0_3 = arith.constant 0 : index
    %c0_4 = arith.constant 0 : index
    %2 = vector.load %arg2[%c0_2, %c0_3, %c0_4] : memref<2x8x32xf32, #tpu.memory_space<vmem>>, vector<2x8x32xf32>
    %3 = vector.shape_cast %2 : vector<2x8x32xf32> to vector<16x32xf32>
    %c0_5 = arith.constant 0 : index
    %c0_6 = arith.constant 0 : index
    %4 = vector.load %arg3[%c0_5, %c0_6] : memref<32x32xf32, #tpu.memory_space<vmem>>, vector<32x32xf32>
    %cst = arith.constant dense<0.000000e+00> : vector<16x32xf32>
    %5 = tpu.matmul %1, %4, %cst {dimension_numbers = #tpu.dot_dimension_numbers<[1], [0], [0], [1], [0, 0, 1, 1], [], []>} : vector<16x32xf32>, vector<32x32xf32>, vector<16x32xf32> -> vector<16x32xf32>
    %c0_7 = arith.constant 0 : index
    %c0_8 = arith.constant 0 : index
    %6 = vector.load %arg4[%c0_7, %c0_8] : memref<32x64xf32, #tpu.memory_space<vmem>>, vector<32x64xf32>
    %cst_9 = arith.constant dense<0.000000e+00> : vector<16x64xf32>
    %7 = tpu.matmul %3, %6, %cst_9 {dimension_numbers = #tpu.dot_dimension_numbers<[1], [0], [0], [1], [0, 0, 1, 1], [], []>} : vector<16x32xf32>, vector<32x64xf32>, vector<16x64xf32> -> vector<16x64xf32>
    %8 = vector.shape_cast %5 : vector<16x32xf32> to vector<2x8x32xf32>
    %9 = vector.extract_strided_slice %7 {offsets = [0, 0], sizes = [16, 32], strides = [1, 1]} : vector<16x64xf32> to vector<16x32xf32>
    %10 = vector.shape_cast %9 : vector<16x32xf32> to vector<2x8x32xf32>
    %11 = vector.extract_strided_slice %7 {offsets = [0, 32], sizes = [16, 32], strides = [1, 1]} : vector<16x64xf32> to vector<16x32xf32>
    %12 = vector.shape_cast %11 : vector<16x32xf32> to vector<2x8x32xf32>
    %cst_10 = arith.constant dense<0.000000e+00> : vector<2x8x8xf32>
    %13 = tpu.matmul %8, %10, %cst_10 {dimension_numbers = #tpu.dot_dimension_numbers<[2], [2], [1], [1], [0, 0, 0, 1, 1, 1], [0], [0]>} : vector<2x8x32xf32>, vector<2x8x32xf32>, vector<2x8x8xf32> -> vector<2x8x8xf32>
    %cst_11 = arith.constant dense<0xFF800000> : vector<2x8xf32>
    %14 = vector.multi_reduction <maximumf>, %13, %cst_11 [2] : vector<2x8x8xf32> to vector<2x8xf32>
    %15 = vector.shape_cast %14 : vector<2x8xf32> to vector<2x8x1xf32>
    %16 = vector.broadcast %15 : vector<2x8x1xf32> to vector<2x8x8xf32>
    %17 = arith.subf %13, %16 : vector<2x8x8xf32>
    %18 = math.exp %17 : vector<2x8x8xf32>
    %cst_12 = arith.constant dense<0.000000e+00> : vector<2x8xf32>
    %19 = vector.multi_reduction <add>, %18, %cst_12 [2] : vector<2x8x8xf32> to vector<2x8xf32>
    %20 = vector.shape_cast %19 : vector<2x8xf32> to vector<2x8x1xf32>
    %21 = tpu.reciprocal %20 {approx = true} : vector<2x8x1xf32> -> vector<2x8x1xf32>
    %cst_13 = arith.constant dense<0.000000e+00> : vector<2x8x32xf32>
    %22 = tpu.matmul %18, %12, %cst_13 {dimension_numbers = #tpu.dot_dimension_numbers<[2], [1], [1], [2], [0, 0, 0, 1, 1, 2], [0], [0]>} : vector<2x8x8xf32>, vector<2x8x32xf32>, vector<2x8x32xf32> -> vector<2x8x32xf32>
    %23 = vector.broadcast %21 : vector<2x8x1xf32> to vector<2x8x32xf32>
    %24 = arith.mulf %22, %23 : vector<2x8x32xf32>
    %25 = vector.shape_cast %24 : vector<2x8x32xf32> to vector<16x32xf32>
    %c0_14 = arith.constant 0 : index
    %c0_15 = arith.constant 0 : index
    %26 = vector.load %arg5[%c0_14, %c0_15] : memref<32x32xf32, #tpu.memory_space<vmem>>, vector<32x32xf32>
    %cst_16 = arith.constant dense<0.000000e+00> : vector<16x32xf32>
    %27 = tpu.matmul %25, %26, %cst_16 {dimension_numbers = #tpu.dot_dimension_numbers<[1], [0], [0], [1], [0, 0, 1, 1], [], []>} : vector<16x32xf32>, vector<32x32xf32>, vector<16x32xf32> -> vector<16x32xf32>
    %28 = vector.shape_cast %27 : vector<16x32xf32> to vector<2x8x32xf32>
    %c0_17 = arith.constant 0 : index
    %c0_18 = arith.constant 0 : index
    %c0_19 = arith.constant 0 : index
    %29 = vector.load %arg6[%c0_17, %c0_18, %c0_19] : memref<2x8x32xf32, #tpu.memory_space<vmem>>, vector<2x8x32xf32>
    tpu.vector_store %arg6[%c0_17, %c0_18, %c0_19], %28 {strides = array<i32>} : memref<2x8x32xf32, #tpu.memory_space<vmem>>, vector<2x8x32xf32>,
    return
  }
  func.func @transform_0(%arg0: i32) -> (i32, i32, i32) {
    %c0_i32 = arith.constant 0 : i32
    %c0_i32_0 = arith.constant 0 : i32
    %c0_i32_1 = arith.constant 0 : i32
    return %arg0, %c0_i32, %c0_i32_0 : i32, i32, i32
  }
  func.func @transform_1(%arg0: i32) -> (i32, i32, i32) {
    %c0_i32 = arith.constant 0 : i32
    %c0_i32_0 = arith.constant 0 : i32
    %c0_i32_1 = arith.constant 0 : i32
    return %arg0, %c0_i32, %c0_i32_0 : i32, i32, i32
  }
  func.func @transform_2(%arg0: i32) -> (i32, i32) {
    %c0_i32 = arith.constant 0 : i32
    %c0_i32_0 = arith.constant 0 : i32
    %c0_i32_1 = arith.constant 0 : i32
    return %c0_i32, %c0_i32_0 : i32, i32
  }
  func.func @transform_3(%arg0: i32) -> (i32, i32) {
    %c0_i32 = arith.constant 0 : i32
    %c0_i32_0 = arith.constant 0 : i32
    %c0_i32_1 = arith.constant 0 : i32
    return %c0_i32, %c0_i32_0 : i32, i32
  }
  func.func @transform_4(%arg0: i32) -> (i32, i32) {
    %c0_i32 = arith.constant 0 : i32
    %c0_i32_0 = arith.constant 0 : i32
    %c0_i32_1 = arith.constant 0 : i32
    return %c0_i32, %c0_i32_0 : i32, i32
  }
  func.func @transform_5(%arg0: i32) -> (i32, i32, i32) {
    %c0_i32 = arith.constant 0 : i32
    %c0_i32_0 = arith.constant 0 : i32
    %c0_i32_1 = arith.constant 0 : i32
    return %arg0, %c0_i32, %c0_i32_0 : i32, i32, i32
  }
}

</mosaic_0001>

<bundles_post_ra>
// kernel: tpu_custom_call.1
= control target key start
LH: loop header
LB: loop body
LE: loop exit
PB: predicated region body
PF: predicated region fallthrough
CT: control target
= control target key end

     0   :  { %10 = vsyncpa [#allocation3], 0  ;;  %s627_s0 = inlined_call_operand.hbm [shape: f32[2,8,32], index: 0, kind: input, shape index: {}]   ;;  %s628_s1 = inlined_call_operand.hbm [shape: f32[2,8,32], index: 1, kind: input, shape index: {}]   ;;  %s629_s2 = inlined_call_operand.hbm [shape: f32[32,32], index: 2, kind: input, shape index: {}]   ;;  %s630_s3 = inlined_call_operand.hbm [shape: f32[32,64], index: 3, kind: input, shape index: {}]   ;;  %s631_s4 = inlined_call_operand.hbm [shape: f32[32,32], index: 4, kind: input, shape index: {}]   ;;  %s632_s5 = inlined_call_operand.hbm [shape: f32[2,8,32], index: 5, kind: output, shape index: {}]  }
   0x1   :  { %11 = vsyncpa [#allocation6], 0 }
   0x2   :  { %12 = vsyncpa [#allocation9], 0 }
   0x3   :  { %13 = vsyncpa [#allocation4], 0  ;;  %s31_s20 = sshll.u32 %s628_s1, 4  ;;  %s534_s21 = smov [#allocation5]   ;;  %s32_s20 = int_to_ptr.hbm [resolvable:$true] %s31_s20 }
   0x4   :  { %s33_s22 = sshll.u32 %s534_s21, 4  ;;  %s57_s25 = sshll.u32 %s630_s3, 4  ;;  %s34_s22 = int_to_ptr.vmem [resolvable:$true] %s33_s22  ;;  %s58_s25 = int_to_ptr.hbm [resolvable:$true] %s57_s25 }
   0x5   :  { %s535_s26 = smov 128   ;;  %s536_s27 = smov 8  }
   0x6   :  { %39 = dma.hbm_to_vmem [thread:$0]  %s32_s20, 256, %s34_s22, [#allocation6], %s535_s26, %s535_s26, %s536_s27  }
   0x7   :  { %s537_s28 = smov [#allocation8]   ;;  %s18_s1 = sshll.u32 %s627_s0, 4  ;;  %s19_s1 = int_to_ptr.hbm [resolvable:$true] %s18_s1 }
   0x8   :  { %s59_s29 = sshll.u32 %s537_s28, 4  ;;  %s44_s8 = sshll.u32 %s629_s2, 4  ;;  %s60_s29 = int_to_ptr.vmem [resolvable:$true] %s59_s29  ;;  %s45_s8 = int_to_ptr.hbm [resolvable:$true] %s44_s8 }
   0x9   :  { %65 = dma.hbm_to_vmem [thread:$0]  %s58_s25, 512, %s60_s29, [#allocation9], %s535_s26, %s535_s26, %s536_s27  }
   0xa   :  { %s538_s9 = smov [#allocation2]   ;;  %s539_s11 = smov [#allocation7]  }
   0xb   :  { %s20_s10 = sshll.u32 %s538_s9, 4  ;;  %s46_s0 = sshll.u32 %s539_s11, 4  ;;  %s21_s10 = int_to_ptr.vmem [resolvable:$true] %s20_s10  ;;  %s47_s0 = int_to_ptr.vmem [resolvable:$true] %s46_s0 }
   0xc   :  { %26 = dma.hbm_to_vmem [thread:$0]  %s19_s1, 256, %s21_s10, [#allocation3], %s535_s26, %s535_s26, %s536_s27  }
   0xd   :  { %s70_s14 = sshll.u32 %s631_s4, 4  ;;  %s540_s2 = smov [#allocation10]   ;;  %s71_s14 = int_to_ptr.hbm [resolvable:$true] %s70_s14 }
   0xe   :  { %52 = dma.hbm_to_vmem [thread:$0]  %s45_s8, 512, %s47_s0, [#allocation6], %s535_s26, %s535_s26, %s536_s27  }
   0xf   :  { %s72_s15 = sshll.u32 %s540_s2, 4  ;;  %s73_s15 = int_to_ptr.vmem [resolvable:$true] %s72_s15 }
  0x10   :  { %78 = dma.hbm_to_vmem [thread:$0]  %s71_s14, 512, %s73_s15, [#allocation9], %s535_s26, %s535_s26, %s536_s27  }
  0x11   :  { %526 = dma.done.wait [#allocation3], 256  }
  0x12   :  { %527 = vsyncadd [#allocation3], 4294967040 }
  0x13   :  { %528 = dma.done.wait [#allocation6], 768  }
  0x14   :  { %529 = vsyncadd [#allocation6], 4294966528 }
  0x15   :  { %530 = dma.done.wait [#allocation9], 1024  }
  0x16   :  { %531 = vsyncadd [#allocation9], 4294966272  ;;  %v140_v0 = vld [vmem:[#allocation8 + $0x18] sm:$0xff]  ;;  %v139_v1 = vld [vmem:[#allocation8 + $0x10] sm:$0xff]  ;;  %vm107_vm0 = vcmask 261120   ;;  %s541_s4 = smov 96  }
  0x17   :  { %v106_v2 = vld [vmem:[#allocation7 + $0x18] sm:$0xff]  ;;  %159 = vmatpush.msra.mxu1 %v140_v0  ;;  %v105_v3 = vld [vmem:[#allocation7 + $0x10] sm:$0xff]  ;;  %v138_v4 = vld [vmem:[#allocation8 + $0x8] sm:$0xff]  ;;  %vm222_vm1 = vcmask 64512   ;;  %s542_s16 = smov [#allocation11]   ;;  %s338_s20 = sshll.u32 %s632_s5, 4  ;;  %s339_s20 = int_to_ptr.hbm [resolvable:$true] %s338_s20 }
  0x18   :  { %126 = vmatpush.msra.mxu0 %v106_v2  ;;  %v104_v5 = vld [vmem:[#allocation7 + $0x8] sm:$0xff]  ;;  %v137_v6 = vld [vmem:[#allocation8] sm:$0xff]  ;;  %v101_v8 = vld [vmem:[#allocation5] sm:$0xff]  ;;  %s336_s17 = sshll.u32 %s542_s16, 4  ;;  %s337_s17 = int_to_ptr.vmem [resolvable:$true] %s336_s17 }
  0x19   :  { %160 = vmatpush.msra.mxu1 %v139_v1  ;;  %v103_v7 = vld [vmem:[#allocation7] sm:$0xff]  ;;  %v102_v10 = vld [vmem:[#allocation5 + $0x8] sm:$0xff]  ;;  %v100_v11 = vld [vmem:[#allocation2 + $0x8] sm:$0xff] }
  0x1a   :  { %127 = vmatpush.msra.mxu0 %v105_v3  ;;  %v99_v9 = vld [vmem:[#allocation2] sm:$0xff]  ;;  %v300_v32 = vld [vmem:[#allocation10 + $0x18] sm:$0xff]  ;;  %v299_v33 = vld [vmem:[#allocation10 + $0x10] sm:$0xff] }
  0x1b   :  { %161 = vmatpush.msra.mxu1 %v138_v4  ;;  %v298_v34 = vld [vmem:[#allocation10 + $0x8] sm:$0xff]  ;;  %v297_v35 = vld [vmem:[#allocation10] sm:$0xff] }
  0x1c   :  { %128 = vmatpush.msra.mxu0 %v104_v5 }
  0x1d   :  { %162 = vmatpush.msra.mxu1 %v137_v6 }
  0x1e   :  { %129 = vmatpush.msra.mxu0 %v103_v7  ;;  %355 = vmatmul.msk.f32.vlgmr.msra.gmra.mxu1 %vm107_vm0, %v101_v8 }
  0x1f   :  { %353 = vmatmul.msk.f32.vlgmr.msra.gmra.mxu0 %vm107_vm0, %v99_v9 }
  0x26   :  { %356 = vmatmul.msk.f32.gmra.mxu1 %vm107_vm0, %v102_v10 }
  0x27   :  { %354 = vmatmul.msk.f32.gmra.mxu0 %vm107_vm0, %v100_v11 }
  0x9b   :  { %v164_v12 = vpop.f32.mrf.mxu1 }
  0x9c   :  { %v131_v13 = vpop.f32.mrf.mxu0  ;;  %243 = vrot.lane.b32.xlu1 %v164_v12, %s541_s4  ;;  %357 = vmatpush.xpose.msk.msra.mxu3 %vm107_vm0, %v164_v12 }
  0x9f   :  { %358 = vmatmul.msk.f32.vlgmr.msra.gmra.mxu3 %vm107_vm0, %v131_v13 }
  0xa3   :  { %v167_v14 = vpop.f32.mrf.mxu1 }
  0xa4   :  { %269 = vrot.lane.b32.xlu1 %v167_v14, %s541_s4  ;;  %359 = vmatpush.xpose.msk.msrb.mxu3 %vm107_vm0, %v167_v14  ;;  %v134_v15 = vpop.f32.mrf.mxu0 }
  0xa7   :  { %360 = vmatmul.msk.f32.vlgmr.msrb.gmra.mxu3 %vm107_vm0, %v134_v15 }
 0x10e   :  { %v244_v16 = vpop.permute.xlu1 %243 }
 0x10f   :  { %264 = vmatpush.msra.mxu2 %v244_v16 }
 0x111   :  { %319 = vmatpush.msrb.mxu2 %v300_v32 }
 0x113   :  { %320 = vmatpush.msrb.mxu2 %v299_v33 }
 0x115   :  { %321 = vmatpush.msrb.mxu2 %v298_v34 }
 0x116   :  { %v270_v17 = vpop.permute.xlu1 %269 }
 0x117   :  { %290 = vmatpush.msra.mxu3 %v270_v17  ;;  %322 = vmatpush.msrb.mxu2 %v297_v35 }
 0x122   :  { %v193_v18 = vpop.f32.mrf.mxu3 }
 0x123   :  { %v223_v19 = vsel %vm222_vm1, %v193_v18, -inf }
 0x124   :  { %224 = vmax.xlane.f32.xlu0 %v223_v19 }
 0x12a   :  { %v219_v20 = vpop.f32.mrf.mxu3 }
 0x12b   :  { %v226_v21 = vsel %vm222_vm1, %v219_v20, -inf }
 0x12c   :  { %227 = vmax.xlane.f32.xlu0 %v226_v21 }
 0x197   :  { %v225_v22 = vpop.xlane.xlu0 %224 }
 0x198   :  { %v229_v23 = vsub.f32 %v193_v18, %v225_v22 }
 0x19a   :  { %v231_v24 = vmul.f32 1.442695, %v229_v23 }
 0x19c   :  { %374 = vpow2.f32 %v231_v24 }
 0x19f   :  { %v228_v25 = vpop.xlane.xlu0 %227 }
 0x1a0   :  { %v230_v26 = vsub.f32 %v219_v20, %v228_v25 }
 0x1a2   :  { %v375_v27 = vpop.eup %374  ;;  %v233_v28 = vmul.f32 1.442695, %v230_v26 }
 0x1a3   :  { %361 = vmatmul.msk.f32.vlgmr.msra.gmra.mxu2 %vm222_vm1, %v375_v27  ;;  %v235_v29 = vsel %vm222_vm1, %v375_v27, 0.0 }
 0x1a4   :  { %376 = vpow2.f32 %v233_v28  ;;  %236 = vadd.xlane.f32.xlu2 %v235_v29 }
 0x1aa   :  { %v377_v30 = vpop.eup %376 }
 0x1ab   :  { %362 = vmatmul.msk.f32.vlgmr.msra.gmra.mxu3 %vm222_vm1, %v377_v30  ;;  %v238_v31 = vsel %vm222_vm1, %v377_v30, 0.0 }
 0x1ac   :  { %239 = vadd.xlane.f32.xlu2 %v238_v31 }
 0x217   :  { %v237_v36 = vpop.xlane.xlu2 %236 }
 0x218   :  { %378 = vrcp.f32 %v237_v36 }
 0x21e   :  { %v379_v38 = vpop.eup %378 }
 0x21f   :  { %v240_v37 = vpop.xlane.xlu2 %239 }
 0x220   :  { %380 = vrcp.f32 %v240_v37 }
 0x226   :  { %v266_v39 = vpop.f32.mrf.mxu2  ;;  %v381_v41 = vpop.eup %380 }
 0x227   :  { %v295_v40 = vmul.f32 %v379_v38, %v266_v39 }
 0x229   :  { %363 = vmatmul.msk.f32.vlgmr.msrb.gmra.mxu2 %vm107_vm0, %v295_v40 }
 0x22e   :  { %v292_v42 = vpop.f32.mrf.mxu3 }
 0x22f   :  { %v296_v43 = vmul.f32 %v381_v41, %v292_v42 }
 0x231   :  { %364 = vmatmul.msk.f32.gmra.mxu2 %vm107_vm0, %v296_v43 }
 0x2ac   :  { %v324_v44 = vpop.f32.mrf.mxu2 }
 0x2ad   :  { %330 = vst.msk [vmem:[#allocation11] sm:$0xff] %vm107_vm0, %v324_v44 }
 0x2b4   :  { %v327_v45 = vpop.f32.mrf.mxu2 }
 0x2b5   :  { %331 = vst.msk [vmem:[#allocation11 + $0x8] sm:$0xff] %vm107_vm0, %v327_v45 }
 0x2b6   :  { %344 = dma.vmem_to_hbm [thread:$0]  %s337_s17, 256, %s339_s20, [#allocation4], %s535_s26, %s535_s26, %s536_s27  }
 0x2b7   :  { %532 = dma.done.wait [#allocation4], 256  }
 0x2b8   :  { %533 = vsyncadd [#allocation4], 4294967040 }
 0x2b9   :  { %349 = vsyncpa [#allocation3], 1 }
 0x2ba   :  { %350 = vsyncpa [#allocation6], 1 }
 0x2bb   :  { %351 = vsyncpa [#allocation9], 1 }
 0x2bc   :  { %352 = vsyncpa [#allocation4], 1 }

</bundles_post_ra>
